<compile_context>
chip_gen: v7x
topology: tpu7x:2x2x1
jax: 0.10.0
libtpu: 0.0.40
codegen_flags: <defaults>
</compile_context>

<pallas_src>
import math

import jax
import jax.numpy as jnp
from jax.experimental import pallas as pl
from jax.experimental.pallas import tpu as pltpu


def _softclip_kernel(x_ref, bound_ref, o_ref):
    # Single-EUP sigmoid: sigmoid(x) = 0.5 * tanh(0.5 * x) + 0.5.
    # Weak-typed Python scalars keep x's dtype (bf16 stays bf16).
    x = x_ref[...]
    s = 0.5 * jnp.tanh(0.5 * x) + 0.5
    # bound_ref is (1, L) in the output dtype; broadcasting over sublanes and
    # the multiply both run on the VALU -> kernel sits on the HBM roofline.
    o_ref[...] = (s * bound_ref[...]).astype(o_ref.dtype)


def _vmem_capacity_bytes():
    try:
        return int(pltpu.get_tpu_info().vmem_capacity_bytes)
    except Exception:
        return 64 << 20  # conservative (v7x-class) default


def _round_up(a, b):
    return -(-a // b) * b


def softclip(x, max_abs_bound):
    """x: (B, N) float array; max_abs_bound: (N,) float array."""
    assert x.ndim == 2 and max_abs_bound.shape == (x.shape[1],)
    B, N = x.shape
    x_dtype = x.dtype
    out_dtype = jnp.promote_types(x_dtype, max_abs_bound.dtype)
    bound = max_abs_bound.astype(out_dtype)

    x_isz = jnp.dtype(x_dtype).itemsize
    o_isz = jnp.dtype(out_dtype).itemsize
    min_isz = min(x_isz, o_isz)
    max_isz = max(x_isz, o_isz)
    # Packed-sublane multiple: 8 for f32, 16 for bf16, 32 for int8/fp8.
    sub = 8 * max(1, 4 // min_isz)

    # ---- lane-dense repack: only when it's a FREE reshape (no jnp.pad) ------
    if N % 128 == 0:
        rows, L, rep = B, N, 1
        x2 = x
    else:
        L = (N * 128) // math.gcd(N, 128)  # lcm(N, 128)
        rep = L // N
        if B % rep == 0 and B >= rep:
            rows = B // rep
            x2 = x.reshape(rows, L)
        else:
            # Keep (B, N): last block dim equals the full array dim (legal),
            # tail lanes use masked stores -- cheaper than padding a full
            # tensor through HBM.
            rows, L, rep = B, N, 1
            x2 = x
    bound_row = (jnp.tile(bound, rep) if rep != 1 else bound).reshape(1, L)

    # ---- row tile from a byte budget (generation-aware) ---------------------
    vmem_cap = _vmem_capacity_bytes()
    if vmem_cap <= (64 << 20):      # v7x-class: 64 MiB VMEM per TC, 2 TCs
        target_tile_bytes = 4 << 20
    else:                           # v5e / v6e: 128 MiB VMEM
        target_tile_bytes = 14 << 20
    tb = max(sub, (target_tile_bytes // (L * max_isz)) // sub * sub)

    if pl.cdiv(rows, tb) < 2:
        if rows >= 2 * sub:
            # Guarantee >= 2 grid steps: feeds both v7x TensorCores and lets
            # BlockSpec double-buffering overlap DMA with compute.
            tb = _round_up((rows + 1) // 2, sub)
        else:
            tb = rows               # tiny input: full-extent block (always legal)
    grid = (pl.cdiv(rows, tb),)

    # 2x double-buffered (input tile + output tile) + resident bound + headroom.
    tile_bytes = tb * L * (x_isz + o_isz)
    need = 2 * tile_bytes + 2 * L * o_isz + (2 << 20)
    vmem_limit = int(min(max(need, 16 << 20), vmem_cap // 2))

    out = pl.pallas_call(
        _softclip_kernel,
        out_shape=jax.ShapeDtypeStruct((rows, L), out_dtype),
        grid_spec=pl.GridSpec(
            grid=grid,
            in_specs=[
                pl.BlockSpec((tb, L), lambda i: (i, 0)),
                pl.BlockSpec((1, L), lambda i: (0, 0)),  # resident across steps
            ],
            out_specs=pl.BlockSpec((tb, L), lambda i: (i, 0)),
        ),
        compiler_params=pltpu.CompilerParams(
            dimension_semantics=("parallel",),
            vmem_limit_bytes=vmem_limit,
        ),
        cost_estimate=pl.CostEstimate(
            flops=3 * rows * L,
            transcendentals=rows * L,
            bytes_accessed=rows * L * (x_isz + o_isz) + L * o_isz,
        ),
    )(x2, bound_row)

    if rep != 1:
        out = out.reshape(B, N)   # contiguous reshape: metadata only, no copy
    return out


class SoftclipLayerPallas:
    """Mirror of the PyTorch SoftclipLayer (forward pass only)."""

    def __init__(self, n, init_abs_bound=1.0, fixed_abs_bound=True):
        self.fixed_abs_bound = fixed_abs_bound
        # TODO(synk): when fixed_abs_bound=False the PyTorch module makes this a
        # learnable nn.Parameter; the forward math is identical, only training differs.
        self.max_abs_bound = jnp.ones((n,), dtype=jnp.float32) * init_abs_bound

    def __call__(self, x):
        return softclip(x, self.max_abs_bound)


if __name__ == "__main__":
    key = jax.random.PRNGKey(0)

    # Primary case matching the module spec: small N (non-multiple of 128),
    # B % rep != 0 -> raw-(B, N) fallback path, full-extent block.
    B, N = 2, 32
    x = jax.random.normal(key, (B, N), dtype=jnp.float32) * 3.0
    layer = SoftclipLayerPallas(n=N, init_abs_bound=1.5, fixed_abs_bound=True)
    out = jax.block_until_ready(layer(x))
    ref = jax.nn.sigmoid(x) * layer.max_abs_bound[None, :]
    assert out.shape == (B, N)
    assert jnp.allclose(out, ref, atol=1e-6, rtol=1e-5), "mismatch (small N)"

    # Lane-dense repack path (free reshape: B % rep == 0), >= 2 grid steps.
    k1 = jax.random.PRNGKey(1)
    x1 = jax.random.normal(k1, (64, 32), dtype=jnp.float32)
    b1 = jnp.linspace(0.5, 2.0, 32, dtype=jnp.float32)
    o1 = jax.block_until_ready(softclip(x1, b1))
    r1 = jax.nn.sigmoid(x1) * b1[None, :]
    assert o1.shape == x1.shape
    assert jnp.allclose(o1, r1, atol=1e-6, rtol=1e-5), "mismatch (repack)"

    # Lane-aligned N with a non-divisible row count -> partial (masked) last block.
    k2 = jax.random.PRNGKey(2)
    x2 = jax.random.normal(k2, (1000, 256), dtype=jnp.float32)
    b2 = jnp.linspace(0.25, 1.75, 256, dtype=jnp.float32)
    o2 = jax.block_until_ready(softclip(x2, b2))
    r2 = jax.nn.sigmoid(x2) * b2[None, :]
    assert o2.shape == x2.shape
    assert jnp.allclose(o2, r2, atol=1e-6, rtol=1e-5), "mismatch (partial block)"

    # Dtype promotion parity: bf16 x with f32 bound -> f32 output.
    k3 = jax.random.PRNGKey(3)
    x3 = jax.random.normal(k3, (8, 256), dtype=jnp.bfloat16)
    b3 = jnp.linspace(0.5, 1.5, 256, dtype=jnp.float32)
    o3 = jax.block_until_ready(softclip(x3, b3))
    assert o3.dtype == jnp.float32
    r3 = jax.nn.sigmoid(x3.astype(jnp.float32)) * b3[None, :]
    assert jnp.allclose(o3, r3, atol=2e-2, rtol=2e-2), "mismatch (bf16 promotion)"

    print("KERNEL_OK")
</pallas_src>

<mosaic_0001>
module attributes {stable_mosaic.version = 11 : i64} {
  func.func @_softclip_kernel(%arg0: i32, %arg1: memref<2x32xf32, #tpu.memory_space<vmem>>, %arg2: memref<1x32xf32, #tpu.memory_space<vmem>>, %arg3: memref<2x32xf32, #tpu.memory_space<vmem>>) attributes {dimension_semantics = [#tpu.dimension_semantics<parallel>], iteration_bounds = array<i64: 1>, scalar_prefetch = 0 : i64, scratch_operands = 0 : i64, tpu.core_type = #tpu.core_type<tc>, window_params = [{transform_indices = @transform_0, window_bounds = array<i64: 2, 32>}, {pipeline_mode = #tpu.pipeline_mode<synchronous>, transform_indices = @transform_1, window_bounds = array<i64: 1, 32>}, {transform_indices = @transform_2, window_bounds = array<i64: 2, 32>}]} {
    %c0 = arith.constant 0 : index
    %c0_0 = arith.constant 0 : index
    %0 = vector.load %arg1[%c0, %c0_0] : memref<2x32xf32, #tpu.memory_space<vmem>>, vector<2x32xf32>
    %cst = arith.constant 5.000000e-01 : f32
    %1 = vector.broadcast %cst : f32 to vector<2x32xf32>
    %2 = arith.mulf %1, %0 : vector<2x32xf32>
    %3 = math.tanh %2 : vector<2x32xf32>
    %cst_1 = arith.constant 5.000000e-01 : f32
    %4 = vector.broadcast %cst_1 : f32 to vector<2x32xf32>
    %5 = arith.mulf %4, %3 : vector<2x32xf32>
    %cst_2 = arith.constant 5.000000e-01 : f32
    %6 = vector.broadcast %cst_2 : f32 to vector<2x32xf32>
    %7 = arith.addf %5, %6 : vector<2x32xf32>
    %c0_3 = arith.constant 0 : index
    %c0_4 = arith.constant 0 : index
    %8 = vector.load %arg2[%c0_3, %c0_4] : memref<1x32xf32, #tpu.memory_space<vmem>>, vector<1x32xf32>
    %9 = vector.broadcast %8 : vector<1x32xf32> to vector<2x32xf32>
    %10 = arith.mulf %7, %9 : vector<2x32xf32>
    %c0_5 = arith.constant 0 : index
    %c0_6 = arith.constant 0 : index
    %11 = vector.load %arg3[%c0_5, %c0_6] : memref<2x32xf32, #tpu.memory_space<vmem>>, vector<2x32xf32>
    tpu.vector_store %arg3[%c0_5, %c0_6], %10 {strides = array<i32>} : memref<2x32xf32, #tpu.memory_space<vmem>>, vector<2x32xf32>,
    return
  }
  func.func @transform_0(%arg0: i32) -> (i32, i32) {
    %c0_i32 = arith.constant 0 : i32
    %c0_i32_0 = arith.constant 0 : i32
    return %arg0, %c0_i32 : i32, i32
  }
  func.func @transform_1(%arg0: i32) -> (i32, i32) {
    %c0_i32 = arith.constant 0 : i32
    %c0_i32_0 = arith.constant 0 : i32
    %c0_i32_1 = arith.constant 0 : i32
    return %c0_i32, %c0_i32_0 : i32, i32
  }
  func.func @transform_2(%arg0: i32) -> (i32, i32) {
    %c0_i32 = arith.constant 0 : i32
    %c0_i32_0 = arith.constant 0 : i32
    return %arg0, %c0_i32 : i32, i32
  }
}

</mosaic_0001>

<bundles_post_ra>
// kernel: tpu_custom_call.1
= control target key start
LH: loop header
LB: loop body
LE: loop exit
PB: predicated region body
PF: predicated region fallthrough
CT: control target
= control target key end

     0   :  { %7 = vsyncpa [#allocation3], 0  ;;  %s151_s0 = inlined_call_operand.hbm [shape: f32[2,32], index: 0, kind: input, shape index: {}]   ;;  %s152_s1 = inlined_call_operand.vmem [shape: f32[1,32], index: 1, kind: input, shape index: {}]   ;;  %s153_s2 = inlined_call_operand.hbm [shape: f32[2,32], index: 2, kind: output, shape index: {}]  }
   0x1   :  { %8 = vsyncpa [#allocation4], 0  ;;  %s107_s9 = smov [#allocation2]   ;;  %s59_s13 = scalar_lea.hbm %s151_s0, 32 }
   0x2   :  { %s15_s10 = sshll.u32 %s107_s9, 4  ;;  %p60_p0 = scmp.ne.s32.totalorder %s151_s0, %s59_s13  ;;  %s16_s10 = int_to_ptr.vmem [resolvable:$true] %s15_s10 }
   0x3   :  { %p63_p1 = scmp.lt.u32.totalorder %s59_s13, %s151_s0 }
   0x5   :  { %p65_p2 = pnand %p63_p1, %p60_p0 }
   0x7   :  { %68 = shalt.err (!%p65_p2)
}
   0x8   :  { %s69_s18 = scalar_lea.vmem %s16_s10, 32  ;;  %p74_p4 = scmp.lt.s32.totalorder %s16_s10, %s16_s10 }
   0x9   :  { %p70_p3 = scmp.ne.s32.totalorder %s16_s10, %s69_s18  ;;  %p75_p5 = scmp.lt.s32.totalorder %s69_s18, %s69_s18 }
   0xb   :  { %p76_p6 = por %p75_p5, %p74_p4 }
   0xd   :  { %p77_p7 = pnand %p76_p6, %p70_p3 }
   0xf   :  { %80 = shalt.err (!%p77_p7)
}
  0x10   :  { %18 = dma.hbm_to_vmem [thread:$0]  %s151_s0, 32, %s16_s10, [#allocation3]  }
  0x11   :  { %103 = dma.done.wait [#allocation3], 32  }
  0x12   :  { %104 = vsyncadd [#allocation3], 4294967264  ;;  %v24_v0 = vld [vmem:[#allocation2] sm:$0x3]  ;;  %s108_s23 = smov [#allocation5]   ;;  %vm37_vm0 = vcmask 254976  }
  0x13   :  { %v25_v1 = vmul.f32 0.5, %v24_v0  ;;  %v54_v4 = vld [vmem:[%s152_s1] ss:$0 sm:$0xff]  ;;  %s45_s24 = sshll.u32 %s108_s23, 4  ;;  %s46_s24 = int_to_ptr.vmem [resolvable:$true] %s45_s24 }
  0x14   :  { %s81_s25 = scalar_lea.vmem %s46_s24, 32  ;;  %p86_p9 = scmp.lt.s32.totalorder %s46_s24, %s46_s24 }
  0x15   :  { %57 = vtanh.f32 %v25_v1  ;;  %p82_p8 = scmp.ne.s32.totalorder %s46_s24, %s81_s25  ;;  %p87_p10 = scmp.lt.s32.totalorder %s81_s25, %s81_s25 }
  0x17   :  { %p88_p11 = por %p87_p10, %p86_p9 }
  0x19   :  { %p89_p12 = pnand %p88_p11, %p82_p8 }
  0x1f   :  { %v58_v2 = vpop.eup %57 }
  0x20   :  { %v27_v3 = vmul.f32 0.5, %v58_v2 }
  0x22   :  { %v28_v5 = vadd.f32 0.5, %v27_v3 }
  0x24   :  { %v36_v6 = vmul.f32 %v54_v4, %v28_v5 }
  0x26   :  { %38 = vst.msk [vmem:[#allocation5] sm:$0x3] %vm37_vm0, %v36_v6 }
  0x27   :  { %92 = shalt.err (!%p89_p12)
}
  0x28   :  { %s93_s27 = scalar_lea.hbm %s153_s2, 32 }
  0x29   :  { %p94_p13 = scmp.ne.s32.totalorder %s153_s2, %s93_s27  ;;  %p97_p0 = scmp.lt.u32.totalorder %s93_s27, %s153_s2 }
  0x2b   :  { %p99_p1 = pnand %p97_p0, %p94_p13 }
  0x2d   :  { %102 = shalt.err (!%p99_p1)
}
  0x2e   :  { %48 = dma.vmem_to_hbm [thread:$0]  %s46_s24, 32, %s153_s2, [#allocation4]  }
  0x2f   :  { %105 = dma.done.wait [#allocation4], 32  }
  0x30   :  { %106 = vsyncadd [#allocation4], 4294967264 }
  0x31   :  { %52 = vsyncpa [#allocation3], 1 }
  0x32   :  { %53 = vsyncpa [#allocation4], 1 }

</bundles_post_ra>
